<compile_context>
chip_gen: v6e
topology: v6e:2x2x1
jax: 0.10.0
libtpu: 0.0.40
codegen_flags: <defaults>
</compile_context>

<pallas_src>
import jax
import jax.numpy as jnp
from jax.experimental import pallas as pl
from jax.experimental.pallas import tpu as pltpu

TOPK = 4        # the PyTorch module hardcodes k=4 (bootstrap_factor unused in forward)
LANES = 128     # TPU lane width
TB = 8          # samples per grid step (fills the 8 sublanes of each f32 vreg)
NSTATES = 4     # independent running top-4 states -> breaks the cmp/select dep chain
TLC_CAP = 512   # max 128-lane chunks per N tile -> 2 MiB per f32 input block


def _round_up(x, m):
    return (x + m - 1) // m * m


def _insert_sorted(top, v):
    """Insert v into the descending-sorted tuple `top` (len TOPK); keep 4 largest.

    Pure VPU compare/select (4 max + 3 useful min per insert). Duplicate values
    occupy separate slots, matching torch.topk multiplicity semantics.
    """
    out = []
    cur = v
    for k in range(TOPK):
        hi = jnp.maximum(top[k], cur)
        lo = jnp.minimum(top[k], cur)   # last one is dead code -> DCE'd
        out.append(hi)
        cur = lo
    return tuple(out)


def _bootstrap_l2_kernel(x_ref, t_ref, o_ref, st_ref):
    nb = pl.program_id(1)
    last = pl.num_programs(1) - 1

    @pl.when(nb == 0)
    def _():
        # Squared errors are >= 0, so zero-valued initial state entries can never
        # displace a real top-4 candidate (ties with 0 are value-equivalent).
        st_ref[...] = jnp.zeros_like(st_ref)

    tl = x_ref.shape[1]
    tlc = tl // LANES           # 128-lane chunks in this tile (static)
    ngroups = tlc // NSTATES    # NSTATES chunks handled per loop iteration

    st = st_ref[...]            # (NSTATES*TOPK, TB, LANES) running state
    init = tuple(tuple(st[s * TOPK + k] for k in range(TOPK))
                 for s in range(NSTATES))

    def body(g, carry):
        new = []
        for s in range(NSTATES):
            start = pl.multiple_of((g * NSTATES + s) * LANES, LANES)
            xv = x_ref[:, pl.ds(start, LANES)].astype(jnp.float32)
            tv = t_ref[:, pl.ds(start, LANES)].astype(jnp.float32)
            d = xv - tv
            new.append(_insert_sorted(carry[s], d * d))
        return tuple(new)

    final = jax.lax.fori_loop(0, ngroups, body, init)

    @pl.when(nb != last)
    def _():
        # Persist running state for the next N tile of this batch block.
        for s in range(NSTATES):
            for k in range(TOPK):
                st_ref[s * TOPK + k] = final[s][k]

    @pl.when(nb == last)
    def _():
        # Candidate set: per-(sample, lane, state) top-4 -> (TB, NSTATES*TOPK*128).
        cand = jnp.concatenate(
            [final[s][k] for s in range(NSTATES) for k in range(TOPK)], axis=-1)
        nc = cand.shape[-1]
        lane_idx = jax.lax.broadcasted_iota(jnp.int32, cand.shape, 1)
        total = jnp.zeros((cand.shape[0], 1), jnp.float32)
        # 4 rounds of per-row max + mask-first-occurrence (runs once per batch
        # block on a tiny candidate set; duplicates handled like torch.topk).
        for _ in range(TOPK):
            m = jnp.max(cand, axis=-1, keepdims=True)
            total = total + m
            first = jnp.min(jnp.where(cand == m, lane_idx, nc),
                            axis=-1, keepdims=True)
            cand = jnp.where(lane_idx == first, -jnp.inf, cand)
        o_ref[...] = total


def bootstraped_pix_l2(input_v, target):
    """input_v, target: (B, C, H, W) arrays (NCHW). Returns scalar f32 loss."""
    assert input_v.shape == target.shape
    B = input_v.shape[0]
    N = 1
    for s in input_v.shape[1:]:
        N *= s
    assert N >= TOPK, "torch.topk(k=4) needs at least 4 elements per sample"

    x2 = input_v.reshape(B, N)
    t2 = target.reshape(B, N)

    # Tile sizing: chunks of 128 lanes, NSTATES-aligned, capped for VMEM.
    n_chunks = -(-N // LANES)
    tlc = min(_round_up(n_chunks, NSTATES), TLC_CAP)
    n_chunks_pad = _round_up(n_chunks, tlc)
    N_pad = n_chunks_pad * LANES
    B_pad = _round_up(B, TB)
    TL = tlc * LANES

    if (B_pad != B) or (N_pad != N):
        pad = ((0, B_pad - B), (0, N_pad - N))
        x2 = jnp.pad(x2, pad)   # zero padding is sum-safe (squared errors >= 0)
        t2 = jnp.pad(t2, pad)

    grid = (B_pad // TB, n_chunks_pad // tlc)
    itemsize = jnp.dtype(x2.dtype).itemsize
    cost = pl.CostEstimate(
        flops=10 * B_pad * N_pad,               # diff, square, ~8 cmp/select per elem
        transcendentals=0,
        bytes_accessed=2 * B_pad * N_pad * itemsize + B_pad * 4,
    )

    per_sample = pl.pallas_call(
        _bootstrap_l2_kernel,
        out_shape=jax.ShapeDtypeStruct((B_pad, 1), jnp.float32),
        grid_spec=pltpu.PrefetchScalarGridSpec(
            num_scalar_prefetch=0,
            grid=grid,
            in_specs=[
                pl.BlockSpec((TB, TL), lambda b, n: (b, n)),
                pl.BlockSpec((TB, TL), lambda b, n: (b, n)),
            ],
            out_specs=pl.BlockSpec((TB, 1), lambda b, n: (b, 0)),
            scratch_shapes=[pltpu.VMEM((NSTATES * TOPK, TB, LANES), jnp.float32)],
        ),
        compiler_params=pltpu.CompilerParams(
            dimension_semantics=("parallel", "arbitrary"),
            vmem_limit_bytes=32 * 1024 * 1024,
        ),
        cost_estimate=cost,
    )(x2, t2)

    # Padded samples contribute exactly 0; sum only real samples anyway.
    return jnp.sum(per_sample[:B, 0])


def _reference(input_v, target):
    """Pure-JAX reference mirroring the PyTorch forward."""
    B = input_v.shape[0]
    m = (input_v - target) ** 2
    m = m.reshape(B, -1)
    top, _ = jax.lax.top_k(m, TOPK)
    return jnp.sum(top)


if __name__ == "__main__":
    key = jax.random.PRNGKey(0)
    k1, k2, k3, k4 = jax.random.split(key, 4)

    # Main test: B=2, C=4, H=W=16 -> N = 1024.
    B, C, H, W = 2, 4, 16, 16
    x = jax.random.normal(k1, (B, C, H, W), dtype=jnp.float32)
    t = jax.random.normal(k2, (B, C, H, W), dtype=jnp.float32)
    out = jax.block_until_ready(bootstraped_pix_l2(x, t))
    ref = _reference(x, t)
    assert jnp.allclose(out, ref, rtol=1e-5, atol=1e-5), (out, ref)

    # Padding-path test: N=300 (not a multiple of 128), B=3 (not a multiple of 8).
    x2 = jax.random.normal(k3, (3, 3, 10, 10), dtype=jnp.float32)
    t2 = jax.random.normal(k4, (3, 3, 10, 10), dtype=jnp.float32)
    out2 = jax.block_until_ready(bootstraped_pix_l2(x2, t2))
    ref2 = _reference(x2, t2)
    assert jnp.allclose(out2, ref2, rtol=1e-5, atol=1e-5), (out2, ref2)

    print("KERNEL_OK")
</pallas_src>

<mosaic_0001>
module attributes {stable_mosaic.version = 11 : i64} {
  func.func @_bootstrap_l2_kernel(%arg0: i32, %arg1: i32, %arg2: memref<8x1024xf32, #tpu.memory_space<vmem>>, %arg3: memref<8x1024xf32, #tpu.memory_space<vmem>>, %arg4: memref<8x1xf32, #tpu.memory_space<vmem>>, %arg5: memref<16x8x128xf32, #tpu.memory_space<vmem>>) attributes {dimension_semantics = [#tpu.dimension_semantics<parallel>, #tpu.dimension_semantics<arbitrary>], iteration_bounds = array<i64: 1, 1>, scalar_prefetch = 0 : i64, scratch_operands = 1 : i64, tpu.core_type = #tpu.core_type<tc>, window_params = [{transform_indices = @transform_0, window_bounds = array<i64: 8, 1024>}, {transform_indices = @transform_1, window_bounds = array<i64: 8, 1024>}, {transform_indices = @transform_2, window_bounds = array<i64: 8, 1>}]} {
    %c0_i32 = arith.constant 0 : i32
    %0 = arith.cmpi eq, %arg1, %c0_i32 : i32
    %1 = arith.extui %0 : i1 to i32
    %c0_i32_0 = arith.constant 0 : i32
    %2 = arith.cmpi ne, %1, %c0_i32_0 : i32
    scf.if %2 {
      %cst = arith.constant 0.000000e+00 : f32
      %44 = vector.broadcast %cst : f32 to vector<16x8x128xf32>
      %c0_9 = arith.constant 0 : index
      %c0_10 = arith.constant 0 : index
      %c0_11 = arith.constant 0 : index
      %45 = vector.load %arg5[%c0_9, %c0_10, %c0_11] : memref<16x8x128xf32, #tpu.memory_space<vmem>>, vector<16x8x128xf32>
      tpu.vector_store %arg5[%c0_9, %c0_10, %c0_11], %44 {strides = array<i32>} : memref<16x8x128xf32, #tpu.memory_space<vmem>>, vector<16x8x128xf32>,
    } else {
    }
    %c0 = arith.constant 0 : index
    %c0_1 = arith.constant 0 : index
    %c0_2 = arith.constant 0 : index
    %3 = vector.load %arg5[%c0, %c0_1, %c0_2] : memref<16x8x128xf32, #tpu.memory_space<vmem>>, vector<16x8x128xf32>
    %4 = vector.extract_strided_slice %3 {offsets = [0, 0, 0], sizes = [1, 8, 128], strides = [1, 1, 1]} : vector<16x8x128xf32> to vector<1x8x128xf32>
    %5 = vector.shape_cast %4 : vector<1x8x128xf32> to vector<8x128xf32>
    %6 = vector.extract_strided_slice %3 {offsets = [1, 0, 0], sizes = [1, 8, 128], strides = [1, 1, 1]} : vector<16x8x128xf32> to vector<1x8x128xf32>
    %7 = vector.shape_cast %6 : vector<1x8x128xf32> to vector<8x128xf32>
    %8 = vector.extract_strided_slice %3 {offsets = [2, 0, 0], sizes = [1, 8, 128], strides = [1, 1, 1]} : vector<16x8x128xf32> to vector<1x8x128xf32>
    %9 = vector.shape_cast %8 : vector<1x8x128xf32> to vector<8x128xf32>
    %10 = vector.extract_strided_slice %3 {offsets = [3, 0, 0], sizes = [1, 8, 128], strides = [1, 1, 1]} : vector<16x8x128xf32> to vector<1x8x128xf32>
    %11 = vector.shape_cast %10 : vector<1x8x128xf32> to vector<8x128xf32>
    %12 = vector.extract_strided_slice %3 {offsets = [4, 0, 0], sizes = [1, 8, 128], strides = [1, 1, 1]} : vector<16x8x128xf32> to vector<1x8x128xf32>
    %13 = vector.shape_cast %12 : vector<1x8x128xf32> to vector<8x128xf32>
    %14 = vector.extract_strided_slice %3 {offsets = [5, 0, 0], sizes = [1, 8, 128], strides = [1, 1, 1]} : vector<16x8x128xf32> to vector<1x8x128xf32>
    %15 = vector.shape_cast %14 : vector<1x8x128xf32> to vector<8x128xf32>
    %16 = vector.extract_strided_slice %3 {offsets = [6, 0, 0], sizes = [1, 8, 128], strides = [1, 1, 1]} : vector<16x8x128xf32> to vector<1x8x128xf32>
    %17 = vector.shape_cast %16 : vector<1x8x128xf32> to vector<8x128xf32>
    %18 = vector.extract_strided_slice %3 {offsets = [7, 0, 0], sizes = [1, 8, 128], strides = [1, 1, 1]} : vector<16x8x128xf32> to vector<1x8x128xf32>
    %19 = vector.shape_cast %18 : vector<1x8x128xf32> to vector<8x128xf32>
    %20 = vector.extract_strided_slice %3 {offsets = [8, 0, 0], sizes = [1, 8, 128], strides = [1, 1, 1]} : vector<16x8x128xf32> to vector<1x8x128xf32>
    %21 = vector.shape_cast %20 : vector<1x8x128xf32> to vector<8x128xf32>
    %22 = vector.extract_strided_slice %3 {offsets = [9, 0, 0], sizes = [1, 8, 128], strides = [1, 1, 1]} : vector<16x8x128xf32> to vector<1x8x128xf32>
    %23 = vector.shape_cast %22 : vector<1x8x128xf32> to vector<8x128xf32>
    %24 = vector.extract_strided_slice %3 {offsets = [10, 0, 0], sizes = [1, 8, 128], strides = [1, 1, 1]} : vector<16x8x128xf32> to vector<1x8x128xf32>
    %25 = vector.shape_cast %24 : vector<1x8x128xf32> to vector<8x128xf32>
    %26 = vector.extract_strided_slice %3 {offsets = [11, 0, 0], sizes = [1, 8, 128], strides = [1, 1, 1]} : vector<16x8x128xf32> to vector<1x8x128xf32>
    %27 = vector.shape_cast %26 : vector<1x8x128xf32> to vector<8x128xf32>
    %28 = vector.extract_strided_slice %3 {offsets = [12, 0, 0], sizes = [1, 8, 128], strides = [1, 1, 1]} : vector<16x8x128xf32> to vector<1x8x128xf32>
    %29 = vector.shape_cast %28 : vector<1x8x128xf32> to vector<8x128xf32>
    %30 = vector.extract_strided_slice %3 {offsets = [13, 0, 0], sizes = [1, 8, 128], strides = [1, 1, 1]} : vector<16x8x128xf32> to vector<1x8x128xf32>
    %31 = vector.shape_cast %30 : vector<1x8x128xf32> to vector<8x128xf32>
    %32 = vector.extract_strided_slice %3 {offsets = [14, 0, 0], sizes = [1, 8, 128], strides = [1, 1, 1]} : vector<16x8x128xf32> to vector<1x8x128xf32>
    %33 = vector.shape_cast %32 : vector<1x8x128xf32> to vector<8x128xf32>
    %34 = vector.extract_strided_slice %3 {offsets = [15, 0, 0], sizes = [1, 8, 128], strides = [1, 1, 1]} : vector<16x8x128xf32> to vector<1x8x128xf32>
    %35 = vector.shape_cast %34 : vector<1x8x128xf32> to vector<8x128xf32>
    %c0_i32_3 = arith.constant 0 : i32
    %c2_i32 = arith.constant 2 : i32
    %36 = arith.addi %c0_i32_3, %c2_i32 : i32
    %c1_i32 = arith.constant 1 : i32
    %37:16 = scf.for %arg6 = %c0_i32_3 to %36 step %c1_i32 iter_args(%arg7 = %5, %arg8 = %7, %arg9 = %9, %arg10 = %11, %arg11 = %13, %arg12 = %15, %arg13 = %17, %arg14 = %19, %arg15 = %21, %arg16 = %23, %arg17 = %25, %arg18 = %27, %arg19 = %29, %arg20 = %31, %arg21 = %33, %arg22 = %35) -> (vector<8x128xf32>, vector<8x128xf32>, vector<8x128xf32>, vector<8x128xf32>, vector<8x128xf32>, vector<8x128xf32>, vector<8x128xf32>, vector<8x128xf32>, vector<8x128xf32>, vector<8x128xf32>, vector<8x128xf32>, vector<8x128xf32>, vector<8x128xf32>, vector<8x128xf32>, vector<8x128xf32>, vector<8x128xf32>)  : i32 {
      %c4_i32 = arith.constant 4 : i32
      %44 = arith.muli %arg6, %c4_i32 : i32
      %c0_i32_9 = arith.constant 0 : i32
      %45 = arith.addi %44, %c0_i32_9 : i32
      %c128_i32 = arith.constant 128 : i32
      %46 = arith.muli %45, %c128_i32 : i32
      %47 = tpu.assume_multiple %46, 128 : i32
      %c0_10 = arith.constant 0 : index
      %48 = arith.index_cast %47 : i32 to index
      %49 = vector.load %arg2[%c0_10, %48] : memref<8x1024xf32, #tpu.memory_space<vmem>>, vector<8x128xf32>
      %c0_11 = arith.constant 0 : index
      %50 = arith.index_cast %47 : i32 to index
      %51 = vector.load %arg3[%c0_11, %50] : memref<8x1024xf32, #tpu.memory_space<vmem>>, vector<8x128xf32>
      %52 = arith.subf %49, %51 : vector<8x128xf32>
      %53 = arith.mulf %52, %52 : vector<8x128xf32>
      %54 = arith.maximumf %arg7, %53 : vector<8x128xf32>
      %55 = arith.minimumf %arg7, %53 : vector<8x128xf32>
      %56 = arith.maximumf %arg8, %55 : vector<8x128xf32>
      %57 = arith.minimumf %arg8, %55 : vector<8x128xf32>
      %58 = arith.maximumf %arg9, %57 : vector<8x128xf32>
      %59 = arith.minimumf %arg9, %57 : vector<8x128xf32>
      %60 = arith.maximumf %arg10, %59 : vector<8x128xf32>
      %c4_i32_12 = arith.constant 4 : i32
      %61 = arith.muli %arg6, %c4_i32_12 : i32
      %c1_i32_13 = arith.constant 1 : i32
      %62 = arith.addi %61, %c1_i32_13 : i32
      %c128_i32_14 = arith.constant 128 : i32
      %63 = arith.muli %62, %c128_i32_14 : i32
      %64 = tpu.assume_multiple %63, 128 : i32
      %c0_15 = arith.constant 0 : index
      %65 = arith.index_cast %64 : i32 to index
      %66 = vector.load %arg2[%c0_15, %65] : memref<8x1024xf32, #tpu.memory_space<vmem>>, vector<8x128xf32>
      %c0_16 = arith.constant 0 : index
      %67 = arith.index_cast %64 : i32 to index
      %68 = vector.load %arg3[%c0_16, %67] : memref<8x1024xf32, #tpu.memory_space<vmem>>, vector<8x128xf32>
      %69 = arith.subf %66, %68 : vector<8x128xf32>
      %70 = arith.mulf %69, %69 : vector<8x128xf32>
      %71 = arith.maximumf %arg11, %70 : vector<8x128xf32>
      %72 = arith.minimumf %arg11, %70 : vector<8x128xf32>
      %73 = arith.maximumf %arg12, %72 : vector<8x128xf32>
      %74 = arith.minimumf %arg12, %72 : vector<8x128xf32>
      %75 = arith.maximumf %arg13, %74 : vector<8x128xf32>
      %76 = arith.minimumf %arg13, %74 : vector<8x128xf32>
      %77 = arith.maximumf %arg14, %76 : vector<8x128xf32>
      %c4_i32_17 = arith.constant 4 : i32
      %78 = arith.muli %arg6, %c4_i32_17 : i32
      %c2_i32_18 = arith.constant 2 : i32
      %79 = arith.addi %78, %c2_i32_18 : i32
      %c128_i32_19 = arith.constant 128 : i32
      %80 = arith.muli %79, %c128_i32_19 : i32
      %81 = tpu.assume_multiple %80, 128 : i32
      %c0_20 = arith.constant 0 : index
      %82 = arith.index_cast %81 : i32 to index
      %83 = vector.load %arg2[%c0_20, %82] : memref<8x1024xf32, #tpu.memory_space<vmem>>, vector<8x128xf32>
      %c0_21 = arith.constant 0 : index
      %84 = arith.index_cast %81 : i32 to index
      %85 = vector.load %arg3[%c0_21, %84] : memref<8x1024xf32, #tpu.memory_space<vmem>>, vector<8x128xf32>
      %86 = arith.subf %83, %85 : vector<8x128xf32>
      %87 = arith.mulf %86, %86 : vector<8x128xf32>
      %88 = arith.maximumf %arg15, %87 : vector<8x128xf32>
      %89 = arith.minimumf %arg15, %87 : vector<8x128xf32>
      %90 = arith.maximumf %arg16, %89 : vector<8x128xf32>
      %91 = arith.minimumf %arg16, %89 : vector<8x128xf32>
      %92 = arith.maximumf %arg17, %91 : vector<8x128xf32>
      %93 = arith.minimumf %arg17, %91 : vector<8x128xf32>
      %94 = arith.maximumf %arg18, %93 : vector<8x128xf32>
      %c4_i32_22 = arith.constant 4 : i32
      %95 = arith.muli %arg6, %c4_i32_22 : i32
      %c3_i32 = arith.constant 3 : i32
      %96 = arith.addi %95, %c3_i32 : i32
      %c128_i32_23 = arith.constant 128 : i32
      %97 = arith.muli %96, %c128_i32_23 : i32
      %98 = tpu.assume_multiple %97, 128 : i32
      %c0_24 = arith.constant 0 : index
      %99 = arith.index_cast %98 : i32 to index
      %100 = vector.load %arg2[%c0_24, %99] : memref<8x1024xf32, #tpu.memory_space<vmem>>, vector<8x128xf32>
      %c0_25 = arith.constant 0 : index
      %101 = arith.index_cast %98 : i32 to index
      %102 = vector.load %arg3[%c0_25, %101] : memref<8x1024xf32, #tpu.memory_space<vmem>>, vector<8x128xf32>
      %103 = arith.subf %100, %102 : vector<8x128xf32>
      %104 = arith.mulf %103, %103 : vector<8x128xf32>
      %105 = arith.maximumf %arg19, %104 : vector<8x128xf32>
      %106 = arith.minimumf %arg19, %104 : vector<8x128xf32>
      %107 = arith.maximumf %arg20, %106 : vector<8x128xf32>
      %108 = arith.minimumf %arg20, %106 : vector<8x128xf32>
      %109 = arith.maximumf %arg21, %108 : vector<8x128xf32>
      %110 = arith.minimumf %arg21, %108 : vector<8x128xf32>
      %111 = arith.maximumf %arg22, %110 : vector<8x128xf32>
      scf.yield %54, %56, %58, %60, %71, %73, %75, %77, %88, %90, %92, %94, %105, %107, %109, %111 : vector<8x128xf32>, vector<8x128xf32>, vector<8x128xf32>, vector<8x128xf32>, vector<8x128xf32>, vector<8x128xf32>, vector<8x128xf32>, vector<8x128xf32>, vector<8x128xf32>, vector<8x128xf32>, vector<8x128xf32>, vector<8x128xf32>, vector<8x128xf32>, vector<8x128xf32>, vector<8x128xf32>, vector<8x128xf32>
    }
    %c2_i32_4 = arith.constant 2 : i32
    %c0_i32_5 = arith.constant 0 : i32
    %38 = arith.cmpi ne, %arg1, %c0_i32_5 : i32
    %39 = arith.extui %38 : i1 to i32
    %c0_i32_6 = arith.constant 0 : i32
    %40 = arith.cmpi ne, %39, %c0_i32_6 : i32
    scf.if %40 {
      %c0_9 = arith.constant 0 : index
      %c0_10 = arith.constant 0 : index
      %c0_11 = arith.constant 0 : index
      %44 = vector.load %arg5[%c0_9, %c0_10, %c0_11] : memref<16x8x128xf32, #tpu.memory_space<vmem>>, vector<1x8x128xf32>
      %45 = vector.shape_cast %44 : vector<1x8x128xf32> to vector<8x128xf32>
      %46 = vector.shape_cast %37#0 : vector<8x128xf32> to vector<1x8x128xf32>
      tpu.vector_store %arg5[%c0_9, %c0_10, %c0_11], %46 {strides = array<i32>} : memref<16x8x128xf32, #tpu.memory_space<vmem>>, vector<1x8x128xf32>,
      %c1 = arith.constant 1 : index
      %c0_12 = arith.constant 0 : index
      %c0_13 = arith.constant 0 : index
      %47 = vector.load %arg5[%c1, %c0_12, %c0_13] : memref<16x8x128xf32, #tpu.memory_space<vmem>>, vector<1x8x128xf32>
      %48 = vector.shape_cast %47 : vector<1x8x128xf32> to vector<8x128xf32>
      %49 = vector.shape_cast %37#1 : vector<8x128xf32> to vector<1x8x128xf32>
      tpu.vector_store %arg5[%c1, %c0_12, %c0_13], %49 {strides = array<i32>} : memref<16x8x128xf32, #tpu.memory_space<vmem>>, vector<1x8x128xf32>,
      %c2 = arith.constant 2 : index
      %c0_14 = arith.constant 0 : index
      %c0_15 = arith.constant 0 : index
      %50 = vector.load %arg5[%c2, %c0_14, %c0_15] : memref<16x8x128xf32, #tpu.memory_space<vmem>>, vector<1x8x128xf32>
      %51 = vector.shape_cast %50 : vector<1x8x128xf32> to vector<8x128xf32>
      %52 = vector.shape_cast %37#2 : vector<8x128xf32> to vector<1x8x128xf32>
      tpu.vector_store %arg5[%c2, %c0_14, %c0_15], %52 {strides = array<i32>} : memref<16x8x128xf32, #tpu.memory_space<vmem>>, vector<1x8x128xf32>,
      %c3 = arith.constant 3 : index
      %c0_16 = arith.constant 0 : index
      %c0_17 = arith.constant 0 : index
      %53 = vector.load %arg5[%c3, %c0_16, %c0_17] : memref<16x8x128xf32, #tpu.memory_space<vmem>>, vector<1x8x128xf32>
      %54 = vector.shape_cast %53 : vector<1x8x128xf32> to vector<8x128xf32>
      %55 = vector.shape_cast %37#3 : vector<8x128xf32> to vector<1x8x128xf32>
      tpu.vector_store %arg5[%c3, %c0_16, %c0_17], %55 {strides = array<i32>} : memref<16x8x128xf32, #tpu.memory_space<vmem>>, vector<1x8x128xf32>,
      %c4 = arith.constant 4 : index
      %c0_18 = arith.constant 0 : index
      %c0_19 = arith.constant 0 : index
      %56 = vector.load %arg5[%c4, %c0_18, %c0_19] : memref<16x8x128xf32, #tpu.memory_space<vmem>>, vector<1x8x128xf32>
      %57 = vector.shape_cast %56 : vector<1x8x128xf32> to vector<8x128xf32>
      %58 = vector.shape_cast %37#4 : vector<8x128xf32> to vector<1x8x128xf32>
      tpu.vector_store %arg5[%c4, %c0_18, %c0_19], %58 {strides = array<i32>} : memref<16x8x128xf32, #tpu.memory_space<vmem>>, vector<1x8x128xf32>,
      %c5 = arith.constant 5 : index
      %c0_20 = arith.constant 0 : index
      %c0_21 = arith.constant 0 : index
      %59 = vector.load %arg5[%c5, %c0_20, %c0_21] : memref<16x8x128xf32, #tpu.memory_space<vmem>>, vector<1x8x128xf32>
      %60 = vector.shape_cast %59 : vector<1x8x128xf32> to vector<8x128xf32>
      %61 = vector.shape_cast %37#5 : vector<8x128xf32> to vector<1x8x128xf32>
      tpu.vector_store %arg5[%c5, %c0_20, %c0_21], %61 {strides = array<i32>} : memref<16x8x128xf32, #tpu.memory_space<vmem>>, vector<1x8x128xf32>,
      %c6 = arith.constant 6 : index
      %c0_22 = arith.constant 0 : index
      %c0_23 = arith.constant 0 : index
      %62 = vector.load %arg5[%c6, %c0_22, %c0_23] : memref<16x8x128xf32, #tpu.memory_space<vmem>>, vector<1x8x128xf32>
      %63 = vector.shape_cast %62 : vector<1x8x128xf32> to vector<8x128xf32>
      %64 = vector.shape_cast %37#6 : vector<8x128xf32> to vector<1x8x128xf32>
      tpu.vector_store %arg5[%c6, %c0_22, %c0_23], %64 {strides = array<i32>} : memref<16x8x128xf32, #tpu.memory_space<vmem>>, vector<1x8x128xf32>,
      %c7 = arith.constant 7 : index
      %c0_24 = arith.constant 0 : index
      %c0_25 = arith.constant 0 : index
      %65 = vector.load %arg5[%c7, %c0_24, %c0_25] : memref<16x8x128xf32, #tpu.memory_space<vmem>>, vector<1x8x128xf32>
      %66 = vector.shape_cast %65 : vector<1x8x128xf32> to vector<8x128xf32>
      %67 = vector.shape_cast %37#7 : vector<8x128xf32> to vector<1x8x128xf32>
      tpu.vector_store %arg5[%c7, %c0_24, %c0_25], %67 {strides = array<i32>} : memref<16x8x128xf32, #tpu.memory_space<vmem>>, vector<1x8x128xf32>,
      %c8 = arith.constant 8 : index
      %c0_26 = arith.constant 0 : index
      %c0_27 = arith.constant 0 : index
      %68 = vector.load %arg5[%c8, %c0_26, %c0_27] : memref<16x8x128xf32, #tpu.memory_space<vmem>>, vector<1x8x128xf32>
      %69 = vector.shape_cast %68 : vector<1x8x128xf32> to vector<8x128xf32>
      %70 = vector.shape_cast %37#8 : vector<8x128xf32> to vector<1x8x128xf32>
      tpu.vector_store %arg5[%c8, %c0_26, %c0_27], %70 {strides = array<i32>} : memref<16x8x128xf32, #tpu.memory_space<vmem>>, vector<1x8x128xf32>,
      %c9 = arith.constant 9 : index
      %c0_28 = arith.constant 0 : index
      %c0_29 = arith.constant 0 : index
      %71 = vector.load %arg5[%c9, %c0_28, %c0_29] : memref<16x8x128xf32, #tpu.memory_space<vmem>>, vector<1x8x128xf32>
      %72 = vector.shape_cast %71 : vector<1x8x128xf32> to vector<8x128xf32>
      %73 = vector.shape_cast %37#9 : vector<8x128xf32> to vector<1x8x128xf32>
      tpu.vector_store %arg5[%c9, %c0_28, %c0_29], %73 {strides = array<i32>} : memref<16x8x128xf32, #tpu.memory_space<vmem>>, vector<1x8x128xf32>,
      %c10 = arith.constant 10 : index
      %c0_30 = arith.constant 0 : index
      %c0_31 = arith.constant 0 : index
      %74 = vector.load %arg5[%c10, %c0_30, %c0_31] : memref<16x8x128xf32, #tpu.memory_space<vmem>>, vector<1x8x128xf32>
      %75 = vector.shape_cast %74 : vector<1x8x128xf32> to vector<8x128xf32>
      %76 = vector.shape_cast %37#10 : vector<8x128xf32> to vector<1x8x128xf32>
      tpu.vector_store %arg5[%c10, %c0_30, %c0_31], %76 {strides = array<i32>} : memref<16x8x128xf32, #tpu.memory_space<vmem>>, vector<1x8x128xf32>,
      %c11 = arith.constant 11 : index
      %c0_32 = arith.constant 0 : index
      %c0_33 = arith.constant 0 : index
      %77 = vector.load %arg5[%c11, %c0_32, %c0_33] : memref<16x8x128xf32, #tpu.memory_space<vmem>>, vector<1x8x128xf32>
      %78 = vector.shape_cast %77 : vector<1x8x128xf32> to vector<8x128xf32>
      %79 = vector.shape_cast %37#11 : vector<8x128xf32> to vector<1x8x128xf32>
      tpu.vector_store %arg5[%c11, %c0_32, %c0_33], %79 {strides = array<i32>} : memref<16x8x128xf32, #tpu.memory_space<vmem>>, vector<1x8x128xf32>,
      %c12 = arith.constant 12 : index
      %c0_34 = arith.constant 0 : index
      %c0_35 = arith.constant 0 : index
      %80 = vector.load %arg5[%c12, %c0_34, %c0_35] : memref<16x8x128xf32, #tpu.memory_space<vmem>>, vector<1x8x128xf32>
      %81 = vector.shape_cast %80 : vector<1x8x128xf32> to vector<8x128xf32>
      %82 = vector.shape_cast %37#12 : vector<8x128xf32> to vector<1x8x128xf32>
      tpu.vector_store %arg5[%c12, %c0_34, %c0_35], %82 {strides = array<i32>} : memref<16x8x128xf32, #tpu.memory_space<vmem>>, vector<1x8x128xf32>,
      %c13 = arith.constant 13 : index
      %c0_36 = arith.constant 0 : index
      %c0_37 = arith.constant 0 : index
      %83 = vector.load %arg5[%c13, %c0_36, %c0_37] : memref<16x8x128xf32, #tpu.memory_space<vmem>>, vector<1x8x128xf32>
      %84 = vector.shape_cast %83 : vector<1x8x128xf32> to vector<8x128xf32>
      %85 = vector.shape_cast %37#13 : vector<8x128xf32> to vector<1x8x128xf32>
      tpu.vector_store %arg5[%c13, %c0_36, %c0_37], %85 {strides = array<i32>} : memref<16x8x128xf32, #tpu.memory_space<vmem>>, vector<1x8x128xf32>,
      %c14 = arith.constant 14 : index
      %c0_38 = arith.constant 0 : index
      %c0_39 = arith.constant 0 : index
      %86 = vector.load %arg5[%c14, %c0_38, %c0_39] : memref<16x8x128xf32, #tpu.memory_space<vmem>>, vector<1x8x128xf32>
      %87 = vector.shape_cast %86 : vector<1x8x128xf32> to vector<8x128xf32>
      %88 = vector.shape_cast %37#14 : vector<8x128xf32> to vector<1x8x128xf32>
      tpu.vector_store %arg5[%c14, %c0_38, %c0_39], %88 {strides = array<i32>} : memref<16x8x128xf32, #tpu.memory_space<vmem>>, vector<1x8x128xf32>,
      %c15 = arith.constant 15 : index
      %c0_40 = arith.constant 0 : index
      %c0_41 = arith.constant 0 : index
      %89 = vector.load %arg5[%c15, %c0_40, %c0_41] : memref<16x8x128xf32, #tpu.memory_space<vmem>>, vector<1x8x128xf32>
      %90 = vector.shape_cast %89 : vector<1x8x128xf32> to vector<8x128xf32>
      %91 = vector.shape_cast %37#15 : vector<8x128xf32> to vector<1x8x128xf32>
      tpu.vector_store %arg5[%c15, %c0_40, %c0_41], %91 {strides = array<i32>} : memref<16x8x128xf32, #tpu.memory_space<vmem>>, vector<1x8x128xf32>,
    } else {
    }
    %c0_i32_7 = arith.constant 0 : i32
    %41 = arith.cmpi eq, %arg1, %c0_i32_7 : i32
    %42 = arith.extui %41 : i1 to i32
    %c0_i32_8 = arith.constant 0 : i32
    %43 = arith.cmpi ne, %42, %c0_i32_8 : i32
    scf.if %43 {
      %44 = tpu.concatenate %37#0, %37#1, %37#2, %37#3, %37#4, %37#5, %37#6, %37#7, %37#8, %37#9, %37#10, %37#11, %37#12, %37#13, %37#14, %37#15 in 1 : vector<8x128xf32>, vector<8x128xf32>, vector<8x128xf32>, vector<8x128xf32>, vector<8x128xf32>, vector<8x128xf32>, vector<8x128xf32>, vector<8x128xf32>, vector<8x128xf32>, vector<8x128xf32>, vector<8x128xf32>, vector<8x128xf32>, vector<8x128xf32>, vector<8x128xf32>, vector<8x128xf32>, vector<8x128xf32> -> vector<8x2048xf32>
      %45 = tpu.iota {dimensions = array<i32: 1>} : vector<8x2048xi32>
      %cst = arith.constant 0.000000e+00 : f32
      %46 = vector.broadcast %cst : f32 to vector<8x1xf32>
      %cst_9 = arith.constant dense<0xFF800000> : vector<8xf32>
      %47 = vector.multi_reduction <maximumf>, %44, %cst_9 [1] : vector<8x2048xf32> to vector<8xf32>
      %48 = vector.shape_cast %47 : vector<8xf32> to vector<8x1xf32>
      %49 = arith.addf %46, %48 : vector<8x1xf32>
      %50 = vector.broadcast %48 : vector<8x1xf32> to vector<8x2048xf32>
      %51 = arith.cmpf oeq, %44, %50 : vector<8x2048xf32>
      %c2048_i32 = arith.constant 2048 : i32
      %52 = vector.broadcast %c2048_i32 : i32 to vector<8x2048xi32>
      %53 = arith.select %51, %45, %52 : vector<8x2048xi1>, vector<8x2048xi32>
      %cst_10 = arith.constant dense<2147483647> : vector<8xi32>
      %54 = vector.multi_reduction <minsi>, %53, %cst_10 [1] : vector<8x2048xi32> to vector<8xi32>
      %55 = vector.shape_cast %54 : vector<8xi32> to vector<8x1xi32>
      %56 = vector.broadcast %55 : vector<8x1xi32> to vector<8x2048xi32>
      %57 = arith.cmpi eq, %45, %56 : vector<8x2048xi32>
      %cst_11 = arith.constant 0xFF800000 : f32
      %58 = vector.broadcast %cst_11 : f32 to vector<8x2048xf32>
      %59 = arith.select %57, %58, %44 : vector<8x2048xi1>, vector<8x2048xf32>
      %cst_12 = arith.constant dense<0xFF800000> : vector<8xf32>
      %60 = vector.multi_reduction <maximumf>, %59, %cst_12 [1] : vector<8x2048xf32> to vector<8xf32>
      %61 = vector.shape_cast %60 : vector<8xf32> to vector<8x1xf32>
      %62 = arith.addf %49, %61 : vector<8x1xf32>
      %63 = vector.broadcast %61 : vector<8x1xf32> to vector<8x2048xf32>
      %64 = arith.cmpf oeq, %59, %63 : vector<8x2048xf32>
      %c2048_i32_13 = arith.constant 2048 : i32
      %65 = vector.broadcast %c2048_i32_13 : i32 to vector<8x2048xi32>
      %66 = arith.select %64, %45, %65 : vector<8x2048xi1>, vector<8x2048xi32>
      %cst_14 = arith.constant dense<2147483647> : vector<8xi32>
      %67 = vector.multi_reduction <minsi>, %66, %cst_14 [1] : vector<8x2048xi32> to vector<8xi32>
      %68 = vector.shape_cast %67 : vector<8xi32> to vector<8x1xi32>
      %69 = vector.broadcast %68 : vector<8x1xi32> to vector<8x2048xi32>
      %70 = arith.cmpi eq, %45, %69 : vector<8x2048xi32>
      %cst_15 = arith.constant 0xFF800000 : f32
      %71 = vector.broadcast %cst_15 : f32 to vector<8x2048xf32>
      %72 = arith.select %70, %71, %59 : vector<8x2048xi1>, vector<8x2048xf32>
      %cst_16 = arith.constant dense<0xFF800000> : vector<8xf32>
      %73 = vector.multi_reduction <maximumf>, %72, %cst_16 [1] : vector<8x2048xf32> to vector<8xf32>
      %74 = vector.shape_cast %73 : vector<8xf32> to vector<8x1xf32>
      %75 = arith.addf %62, %74 : vector<8x1xf32>
      %76 = vector.broadcast %74 : vector<8x1xf32> to vector<8x2048xf32>
      %77 = arith.cmpf oeq, %72, %76 : vector<8x2048xf32>
      %c2048_i32_17 = arith.constant 2048 : i32
      %78 = vector.broadcast %c2048_i32_17 : i32 to vector<8x2048xi32>
      %79 = arith.select %77, %45, %78 : vector<8x2048xi1>, vector<8x2048xi32>
      %cst_18 = arith.constant dense<2147483647> : vector<8xi32>
      %80 = vector.multi_reduction <minsi>, %79, %cst_18 [1] : vector<8x2048xi32> to vector<8xi32>
      %81 = vector.shape_cast %80 : vector<8xi32> to vector<8x1xi32>
      %82 = vector.broadcast %81 : vector<8x1xi32> to vector<8x2048xi32>
      %83 = arith.cmpi eq, %45, %82 : vector<8x2048xi32>
      %cst_19 = arith.constant 0xFF800000 : f32
      %84 = vector.broadcast %cst_19 : f32 to vector<8x2048xf32>
      %85 = arith.select %83, %84, %72 : vector<8x2048xi1>, vector<8x2048xf32>
      %cst_20 = arith.constant dense<0xFF800000> : vector<8xf32>
      %86 = vector.multi_reduction <maximumf>, %85, %cst_20 [1] : vector<8x2048xf32> to vector<8xf32>
      %87 = vector.shape_cast %86 : vector<8xf32> to vector<8x1xf32>
      %88 = arith.addf %75, %87 : vector<8x1xf32>
      %c0_21 = arith.constant 0 : index
      %c0_22 = arith.constant 0 : index
      %89 = vector.load %arg4[%c0_21, %c0_22] : memref<8x1xf32, #tpu.memory_space<vmem>>, vector<8x1xf32>
      tpu.vector_store %arg4[%c0_21, %c0_22], %88 {strides = array<i32>} : memref<8x1xf32, #tpu.memory_space<vmem>>, vector<8x1xf32>,
    } else {
    }
    return
  }
  func.func @transform_0(%arg0: i32, %arg1: i32) -> (i32, i32) {
    %c0_i32 = arith.constant 0 : i32
    return %arg0, %arg1 : i32, i32
  }
  func.func @transform_1(%arg0: i32, %arg1: i32) -> (i32, i32) {
    %c0_i32 = arith.constant 0 : i32
    return %arg0, %arg1 : i32, i32
  }
  func.func @transform_2(%arg0: i32, %arg1: i32) -> (i32, i32) {
    %c0_i32 = arith.constant 0 : i32
    %c0_i32_0 = arith.constant 0 : i32
    return %arg0, %c0_i32 : i32, i32
  }
}

</mosaic_0001>

<bundles_post_ra>
// kernel: tpu_custom_call.1
= control target key start
LH: loop header
LB: loop body
LE: loop exit
PB: predicated region body
PF: predicated region fallthrough
CT: control target
= control target key end

     0   :  { %7 = vsyncpa [#allocation4], 0  ;;  %s1808_s0 = inlined_call_operand.hbm [shape: f32[8,1024], index: 0, kind: input, shape index: {}]   ;;  %s1809_s1 = inlined_call_operand.hbm [shape: f32[8,1024], index: 1, kind: input, shape index: {}]   ;;  %s1810_s2 = inlined_call_operand.vmem [shape: f32[8,1], index: 2, kind: output, shape index: {}]  }
   0x1   :  { %8 = vsyncpa [#allocation6], 0  ;;  %s1037_s9 = smov [#allocation3]   ;;  %s1038_s11 = smov [#allocation5]  }
   0x2   :  { %s15_s10 = sshll.u32 %s1037_s9, 4  ;;  %s25_s12 = sshll.u32 %s1038_s11, 4  ;;  %s16_s10 = int_to_ptr.vmem [resolvable:$true] %s15_s10  ;;  %s26_s12 = int_to_ptr.vmem [resolvable:$true] %s25_s12 }
   0x3   :  { %s865_s13 = scalar_lea.vmem %s16_s10, 1024  ;;  %p870_p1 = scmp.lt.s32.totalorder %s16_s10, %s16_s10 }
   0x4   :  { %p866_p0 = scmp.ne.s32.totalorder %s16_s10, %s865_s13  ;;  %p871_p2 = scmp.lt.s32.totalorder %s865_s13, %s865_s13 }
   0x6   :  { %p872_p3 = por %p871_p2, %p870_p1 }
   0x8   :  { %p873_p4 = pnand %p872_p3, %p866_p0 }
   0xa   :  { %876 = shalt.err (!%p873_p4)
}
   0xb   :  { %18 = dma.hbm_to_vmem [thread:$0]  %s1808_s0, 1024, %s16_s10, [#allocation4]  }
   0xc   :  { %s885_s16 = scalar_lea.vmem %s26_s12, 1024  ;;  %p890_p6 = scmp.lt.s32.totalorder %s26_s12, %s26_s12 }
   0xd   :  { %p886_p5 = scmp.ne.s32.totalorder %s26_s12, %s885_s16  ;;  %p891_p7 = scmp.lt.s32.totalorder %s885_s16, %s885_s16 }
   0xf   :  { %p892_p8 = por %p891_p7, %p890_p6 }
  0x11   :  { %p893_p9 = pnand %p892_p8, %p886_p5 }
  0x13   :  { %896 = shalt.err (!%p893_p9)
}
  0x14   :  { %28 = dma.hbm_to_vmem [thread:$0]  %s1809_s1, 1024, %s26_s12, [#allocation6]  }
  0x15   :  { %965 = dma.done.wait [#allocation4], 1024  }
  0x16   :  { %966 = vsyncadd [#allocation4], 4294966272 }
  0x17   :  { %967 = dma.done.wait [#allocation6], 1024  }
  0x18   :  { %968 = vsyncadd [#allocation6], 4294966272  ;;  %v1060_v0 = vmov 0.0   ;;  %v1062_v1 = vmov 0.0   ;;  %v1064_v2 = vmov 0.0   ;;  %v1066_v3 = vmov 0.0  }
  0x19   :  { %v1068_v4 = vmov 0.0   ;;  %v1070_v5 = vmov 0.0   ;;  %v1072_v6 = vmov 0.0   ;;  %v1074_v7 = vmov 0.0   ;;  %s1092_s0 = smov 0  }
  0x1a   :  { %v1076_v8 = vmov 0.0   ;;  %v1078_v9 = vmov 0.0   ;;  %v1080_v10 = vmov 0.0   ;;  %v1082_v11 = vmov 0.0  }
  0x1b   :  { %v1084_v12 = vmov 0.0   ;;  %v1086_v13 = vmov 0.0   ;;  %v1088_v14 = vmov 0.0   ;;  %v1090_v15 = vmov 0.0  }
  0x1c LB: > { %s697_s1 = sshll.u32 %s1035_s0, 9  ;;  %s76_s0 = sadd.s32 1, %s1035_s0   ;;  %s1035_s0 = sphi %s1092_s0, %s76_s0   ;;  %v1031_v15 = vphi %v1090_v15, %v1831_v15   ;;  %v1027_v14 = vphi %v1088_v14, %v1830_v14   ;;  %v1023_v13 = vphi %v1086_v13, %v1829_v13   ;;  %v1019_v12 = vphi %v1084_v12, %v1828_v12   ;;  %v1015_v11 = vphi %v1082_v11, %v1827_v11   ;;  %v1011_v10 = vphi %v1080_v10, %v1826_v10   ;;  %v1007_v9 = vphi %v1078_v9, %v1825_v9   ;;  %v1003_v8 = vphi %v1076_v8, %v1824_v8   ;;  %v999_v7 = vphi %v1074_v7, %v1823_v7   ;;  %v995_v6 = vphi %v1072_v6, %v1822_v6   ;;  %v991_v5 = vphi %v1070_v5, %v1821_v5   ;;  %v987_v4 = vphi %v1068_v4, %v1820_v4   ;;  %v983_v3 = vphi %v1066_v3, %v1819_v3   ;;  %v979_v2 = vphi %v1064_v2, %v1818_v2   ;;  %v975_v1 = vphi %v1062_v1, %v1817_v1   ;;  %v971_v0 = vphi %v1060_v0, %v1816_v0  }
  0x1d   : > { %s94_s19 = sshra.s32 %s697_s1, 7  ;;  %s711_s20 = sadd.s32 128, %s697_s1 }
  0x1e   : > { %s698_s21 = sshll.u32 %s94_s19, 3  ;;  %s114_s22 = sshra.s32 %s711_s20, 7 }
  0x1f   : > { %s97_s23 = scalar_lea.vmem [#allocation3], %s698_s21  ;;  %s100_s24 = scalar_lea.vmem [#allocation5], %s698_s21 }
  0x20   : > { %v98_v16 = vld [vmem:[%s97_s23] sm:$0xff]  ;;  %s702_s25 = sshll.u32 %s114_s22, 3  ;;  %s713_s26 = sadd.s32 256, %s697_s1 }
  0x21   : > { %v101_v17 = vld [vmem:[%s100_s24] sm:$0xff]  ;;  %s117_s27 = scalar_lea.vmem [#allocation3], %s702_s25  ;;  %s120_s28 = scalar_lea.vmem [#allocation5], %s702_s25 }
  0x22   : > { %v102_v18 = vsub.f32 %v98_v16, %v101_v17  ;;  %v118_v19 = vld [vmem:[%s117_s27] sm:$0xff]  ;;  %s133_s29 = sshra.s32 %s713_s26, 7  ;;  %s715_s30 = sadd.s32 384, %s697_s1 }
  0x23   : > { %v121_v20 = vld [vmem:[%s120_s28] sm:$0xff]  ;;  %s705_s3 = sshll.u32 %s133_s29, 3  ;;  %s152_s4 = sshra.s32 %s715_s30, 7 }
  0x24   : > { %v122_v21 = vsub.f32 %v118_v19, %v121_v20  ;;  %v103_v22 = vmul.f32 %v102_v18, %v102_v18  ;;  %s136_s5 = scalar_lea.vmem [#allocation3], %s705_s3  ;;  %s139_s6 = scalar_lea.vmem [#allocation5], %s705_s3 }
  0x25   : > { %v137_v24 = vld [vmem:[%s136_s5] sm:$0xff]  ;;  %s708_s7 = sshll.u32 %s152_s4, 3  ;;  %p1173_p10 = scmp.ge.s32.totalorder %s76_s0, 2  }
  0x26   : > { %v123_v23 = vmul.f32 %v122_v21, %v122_v21  ;;  %v140_v25 = vld [vmem:[%s139_s6] sm:$0xff]  ;;  %v1128_v26 = vmax.f32 %v1031_v15, %v103_v22   ;;  %v105_v27 = vmin.f32 %v1031_v15, %v103_v22  ;;  %s155_s8 = scalar_lea.vmem [#allocation3], %s708_s7  ;;  %s158_s9 = scalar_lea.vmem [#allocation5], %s708_s7 }
  0x27   : > { %v141_v28 = vsub.f32 %v137_v24, %v140_v25  ;;  %v156_v31 = vld [vmem:[%s155_s8] sm:$0xff] }
  0x28   : > { %v1130_v29 = vmax.f32 %v1015_v11, %v123_v23   ;;  %v125_v30 = vmin.f32 %v1015_v11, %v123_v23  ;;  %v159_v32 = vld [vmem:[%s158_s9] sm:$0xff]  ;;  %v1132_v33 = vmax.f32 %v1027_v14, %v105_v27   ;;  %v107_v34 = vmin.f32 %v1027_v14, %v105_v27 }
  0x29   : > { %v142_v35 = vmul.f32 %v141_v28, %v141_v28  ;;  %v160_v36 = vsub.f32 %v156_v31, %v159_v32  ;;  %v1831_v15 = vmov %v1128_v26 }
  0x2a   : > { %v1134_v37 = vmax.f32 %v1011_v10, %v125_v30   ;;  %v127_v38 = vmin.f32 %v1011_v10, %v125_v30  ;;  %v1136_v39 = vmax.f32 %v1023_v13, %v107_v34   ;;  %v109_v40 = vmin.f32 %v1023_v13, %v107_v34 }
  0x2b   : > { %v1138_v41 = vmax.f32 %v999_v7, %v142_v35   ;;  %v144_v42 = vmin.f32 %v999_v7, %v142_v35  ;;  %v161_v45 = vmul.f32 %v160_v36, %v160_v36  ;;  %v1827_v11 = vmov %v1130_v29 }
  0x2c   : > { %v1140_v43 = vmax.f32 %v1007_v9, %v127_v38   ;;  %v129_v44 = vmin.f32 %v1007_v9, %v127_v38  ;;  %v1142_v12 = vmax.f32 %v1019_v12, %v109_v40   ;;  %v1826_v10 = vmov %v1134_v37 }
  0x2d   : > { %v1145_v47 = vmax.f32 %v995_v6, %v144_v42   ;;  %v146_v48 = vmin.f32 %v995_v6, %v144_v42  ;;  %v1151_v50 = vmax.f32 %v983_v3, %v161_v45   ;;  %v163_v51 = vmin.f32 %v983_v3, %v161_v45 }
  0x2e   : > { %v1811_v46 = vmov %v1142_v12  ;;  %v1148_v8 = vmax.f32 %v1003_v8, %v129_v44   ;;  %v1823_v7 = vmov %v1138_v41  ;;  %v1825_v9 = vmov %v1140_v43 }
  0x2f   : > { %v1155_v52 = vmax.f32 %v991_v5, %v146_v48   ;;  %v148_v53 = vmin.f32 %v991_v5, %v146_v48  ;;  %v1159_v54 = vmax.f32 %v979_v2, %v163_v51   ;;  %v165_v55 = vmin.f32 %v979_v2, %v163_v51 }
  0x30   : > { %v1812_v49 = vmov %v1148_v8  ;;  %v1819_v3 = vmov %v1151_v50  ;;  %v1822_v6 = vmov %v1145_v47  ;;  %v1828_v12 = vmov %v1811_v46 }
  0x31   : > { %v1163_v4 = vmax.f32 %v987_v4, %v148_v53   ;;  %v1166_v57 = vmax.f32 %v975_v1, %v165_v55   ;;  %v167_v58 = vmin.f32 %v975_v1, %v165_v55  ;;  %v1818_v2 = vmov %v1159_v54 }
  0x32   : > { %v1821_v5 = vmov %v1155_v52  ;;  %v1824_v8 = vmov %v1812_v49  ;;  %v1829_v13 = vmov %v1136_v39  ;;  %v1830_v14 = vmov %v1132_v33  ;;  %75 = sbr.rel (!%p1173_p10) target bundleno = 28 (0x1c), region = 78 }
  0x33   : > { %v1813_v56 = vmov %v1163_v4  ;;  %v1170_v0 = vmax.f32 %v971_v0, %v167_v58   ;;  %v1817_v1 = vmov %v1166_v57  ;;  %v224_v60 = vmax.f32 (%p1173_p10), %v1128_v26, %v1130_v29 }
  0x34   : > { %v1820_v4 = vmov %v1813_v56  ;;  %v225_v61 = vmax.f32 (%p1173_p10), %v1132_v33, %v1134_v37  ;;  %v226_v62 = vmax.f32 (%p1173_p10), %v1136_v39, %v1140_v43  ;;  %v227_v63 = vmax.f32 (%p1173_p10), %v1811_v46, %v1812_v49 }
  0x35   : > { %v1814_v59 = vmov %v1170_v0  ;;  %v228_v15 = vmax.f32 (%p1173_p10), %v224_v60, %v1138_v41  ;;  %v207_v7 = vlaneseq (%p1173_p10) }
  0x36   : > { %v1816_v0 = vmov %v1814_v59  ;;  %v229_v16 = vmax.f32 (%p1173_p10), %v225_v61, %v1145_v47  ;;  %v230_v17 = vmax.f32 (%p1173_p10), %v226_v62, %v1155_v52  ;;  %v231_v18 = vmax.f32 (%p1173_p10), %v227_v63, %v1813_v56 }
  0x37   :  { %v232_v0 = vmax.f32 %v228_v15, %v1151_v50  ;;  %v1245_v8 = vand.u32 127, %v207_v7 }
  0x38   :  { %v233_v1 = vmax.f32 %v229_v16, %v1159_v54  ;;  %v234_v2 = vmax.f32 %v230_v17, %v1166_v57  ;;  %v235_v3 = vmax.f32 %v231_v18, %v1814_v59 }
  0x39   :  { %v1248_v9 = vadd.s32 128, %v1245_v8  ;;  %v1251_v10 = vadd.s32 256, %v1245_v8  ;;  %v1254_v11 = vadd.s32 384, %v1245_v8  ;;  %v1257_v12 = vadd.s32 512, %v1245_v8 }
  0x3a   :  { %v236_v4 = vmax.f32 %v232_v0, %v233_v1  ;;  %v237_v5 = vmax.f32 %v234_v2, %v235_v3  ;;  %v1260_v13 = vadd.s32 640, %v1245_v8  ;;  %v1263_v14 = vadd.s32 768, %v1245_v8 }
  0x3b   :  { %v1266_v19 = vadd.s32 896, %v1245_v8  ;;  %v1269_v20 = vadd.s32 1024, %v1245_v8  ;;  %v1272_v21 = vadd.s32 1152, %v1245_v8  ;;  %v1275_v22 = vadd.s32 1280, %v1245_v8 }
  0x3c   :  { %v238_v6 = vmax.f32 %v236_v4, %v237_v5  ;;  %v1278_v23 = vadd.s32 1408, %v1245_v8  ;;  %v1283_v25 = vadd.s32 1536, %v1245_v8  ;;  %v1286_v27 = vadd.s32 1664, %v1245_v8 }
  0x3d   :  { %v1289_v28 = vadd.s32 1792, %v1245_v8  ;;  %v1292_v30 = vadd.s32 1920, %v1245_v8 }
  0x3e   :  { %239 = vmax.xlane.f32.xlu0 %v238_v6 }
  0xc7   :  { %v1280_v24 = vpop.xlane.xlu0 %239 }
  0xc8   :  { %vm242_vm0 = vcmp.eq.f32.partialorder %v1128_v26, %v1280_v24  ;;  %vm243_vm1 = vcmp.eq.f32.partialorder %v1132_v33, %v1280_v24  ;;  %vm244_vm2 = vcmp.eq.f32.partialorder %v1136_v39, %v1280_v24  ;;  %vm245_vm3 = vcmp.eq.f32.partialorder %v1811_v46, %v1280_v24 }
  0xc9   :  { %vm246_vm4 = vcmp.eq.f32.partialorder %v1130_v29, %v1280_v24  ;;  %vm247_vm5 = vcmp.eq.f32.partialorder %v1134_v37, %v1280_v24  ;;  %vm248_vm6 = vcmp.eq.f32.partialorder %v1140_v43, %v1280_v24  ;;  %vm249_vm7 = vcmp.eq.f32.partialorder %v1812_v49, %v1280_v24 }
  0xca   :  { %vm250_vm8 = vcmp.eq.f32.partialorder %v1138_v41, %v1280_v24  ;;  %vm251_vm9 = vcmp.eq.f32.partialorder %v1145_v47, %v1280_v24  ;;  %vm252_vm10 = vcmp.eq.f32.partialorder %v1155_v52, %v1280_v24  ;;  %vm253_vm11 = vcmp.eq.f32.partialorder %v1813_v56, %v1280_v24 }
  0xcb   :  { %vm254_vm12 = vcmp.eq.f32.partialorder %v1151_v50, %v1280_v24  ;;  %vm255_vm13 = vcmp.eq.f32.partialorder %v1159_v54, %v1280_v24  ;;  %vm256_vm14 = vcmp.eq.f32.partialorder %v1166_v57, %v1280_v24  ;;  %vm257_vm15 = vcmp.eq.f32.partialorder %v1814_v59, %v1280_v24 }
  0xcc   :  { %v258_v31 = vsel %vm242_vm0, %v1245_v8, 2048  ;;  %v259_v32 = vsel %vm243_vm1, %v1248_v9, 2048  ;;  %v260_v34 = vsel %vm244_vm2, %v1251_v10, 2048  ;;  %v261_v35 = vsel %vm245_vm3, %v1254_v11, 2048 }
  0xcd   :  { %v262_v36 = vsel %vm246_vm4, %v1257_v12, 2048  ;;  %v263_v38 = vsel %vm247_vm5, %v1260_v13, 2048  ;;  %v264_v40 = vsel %vm248_vm6, %v1263_v14, 2048  ;;  %v265_v42 = vsel %vm249_vm7, %v1266_v19, 2048 }
  0xce   :  { %v266_v44 = vsel %vm250_vm8, %v1269_v20, 2048  ;;  %v267_v45 = vsel %vm251_vm9, %v1272_v21, 2048  ;;  %v268_v48 = vsel %vm252_vm10, %v1275_v22, 2048  ;;  %v269_v51 = vsel %vm253_vm11, %v1278_v23, 2048 }
  0xcf   :  { %v270_v53 = vsel %vm254_vm12, %v1283_v25, 2048  ;;  %v271_v55 = vsel %vm255_vm13, %v1286_v27, 2048  ;;  %v272_v58 = vsel %vm256_vm14, %v1289_v28, 2048  ;;  %v273_v60 = vsel %vm257_vm15, %v1292_v30, 2048 }
  0xd0   :  { %vm274_vm0 = vcmp.lt.s32.totalorder %v258_v31, %v262_v36  ;;  %vm276_vm1 = vcmp.lt.s32.totalorder %v259_v32, %v263_v38  ;;  %vm278_vm2 = vcmp.lt.s32.totalorder %v260_v34, %v264_v40  ;;  %vm280_vm3 = vcmp.lt.s32.totalorder %v261_v35, %v265_v42 }
  0xd1   :  { %v275_v61 = vsel %vm274_vm0, %v258_v31, %v262_v36  ;;  %v277_v62 = vsel %vm276_vm1, %v259_v32, %v263_v38  ;;  %v279_v63 = vsel %vm278_vm2, %v260_v34, %v264_v40  ;;  %v281_v15 = vsel %vm280_vm3, %v261_v35, %v265_v42 }
  0xd2   :  { %vm282_vm4 = vcmp.lt.s32.totalorder %v275_v61, %v266_v44  ;;  %vm284_vm5 = vcmp.lt.s32.totalorder %v277_v62, %v267_v45  ;;  %vm286_vm6 = vcmp.lt.s32.totalorder %v279_v63, %v268_v48  ;;  %vm288_vm7 = vcmp.lt.s32.totalorder %v281_v15, %v269_v51 }
  0xd3   :  { %v283_v16 = vsel %vm282_vm4, %v275_v61, %v266_v44  ;;  %v285_v17 = vsel %vm284_vm5, %v277_v62, %v267_v45  ;;  %v287_v18 = vsel %vm286_vm6, %v279_v63, %v268_v48  ;;  %v289_v0 = vsel %vm288_vm7, %v281_v15, %v269_v51 }
  0xd4   :  { %vm290_vm8 = vcmp.lt.s32.totalorder %v283_v16, %v270_v53  ;;  %vm292_vm9 = vcmp.lt.s32.totalorder %v285_v17, %v271_v55  ;;  %vm294_vm10 = vcmp.lt.s32.totalorder %v287_v18, %v272_v58  ;;  %vm296_vm11 = vcmp.lt.s32.totalorder %v289_v0, %v273_v60 }
  0xd5   :  { %v291_v1 = vsel %vm290_vm8, %v283_v16, %v270_v53  ;;  %v293_v2 = vsel %vm292_vm9, %v285_v17, %v271_v55  ;;  %v295_v3 = vsel %vm294_vm10, %v287_v18, %v272_v58  ;;  %v297_v4 = vsel %vm296_vm11, %v289_v0, %v273_v60 }
  0xd6   :  { %vm298_vm12 = vcmp.lt.s32.totalorder %v291_v1, %v293_v2  ;;  %vm300_vm13 = vcmp.lt.s32.totalorder %v295_v3, %v297_v4 }
  0xd7   :  { %v299_v5 = vsel %vm298_vm12, %v291_v1, %v293_v2  ;;  %v301_v6 = vsel %vm300_vm13, %v295_v3, %v297_v4 }
  0xd8   :  { %vm302_vm14 = vcmp.lt.s32.totalorder %v299_v5, %v301_v6 }
  0xd9   :  { %v303_v7 = vsel %vm302_vm14, %v299_v5, %v301_v6 }
  0xda   :  { %v305_v31 = vshra.s32 %v303_v7, 16  ;;  %v304_v34 = vand.u32 65535, %v303_v7 }
  0xdc   :  { %v307_v32 = vcvt.s32.f32 %v305_v31  ;;  %v306_v36 = vcvt.s32.f32 %v304_v34 }
  0xde   :  { %308 = vmin.xlane.f32.xlu0 %v307_v32 }
 0x167   :  { %v309_v35 = vpop.xlane.xlu0 %308 }
 0x168   :  { %vm310_vm15 = vcmp.eq.f32.partialorder %v307_v32, %v309_v35  ;;  %v315_v40 = vcvt.f32.s32 %v309_v35 }
 0x169   :  { %v311_v38 = vsel %vm310_vm15, %v306_v36, inf }
 0x16a   :  { %312 = vmin.xlane.f32.xlu1 %v311_v38  ;;  %v316_v44 = vshll.u32 %v315_v40, 16 }
 0x1f3   :  { %v313_v42 = vpop.xlane.xlu1 %312 }
 0x1f4   :  { %v314_v45 = vcvt.f32.s32 %v313_v42 }
 0x1f6   :  { %v317_v48 = vadd.s32 %v316_v44, %v314_v45 }
 0x1f8   :  { %vm318_vm0 = vcmp.eq.s32.totalorder %v1245_v8, %v317_v48  ;;  %vm319_vm1 = vcmp.eq.s32.totalorder %v1248_v9, %v317_v48  ;;  %vm320_vm2 = vcmp.eq.s32.totalorder %v1251_v10, %v317_v48  ;;  %vm321_vm3 = vcmp.eq.s32.totalorder %v1254_v11, %v317_v48 }
 0x1f9   :  { %vm322_vm4 = vcmp.eq.s32.totalorder %v1257_v12, %v317_v48  ;;  %vm323_vm5 = vcmp.eq.s32.totalorder %v1260_v13, %v317_v48  ;;  %vm324_vm6 = vcmp.eq.s32.totalorder %v1263_v14, %v317_v48  ;;  %vm325_vm7 = vcmp.eq.s32.totalorder %v1266_v19, %v317_v48 }
 0x1fa   :  { %v1399_v51 = vsel %vm318_vm0, -inf, %v1128_v26  ;;  %v1402_v53 = vsel %vm319_vm1, -inf, %v1132_v33  ;;  %v1405_v55 = vsel %vm320_vm2, -inf, %v1136_v39  ;;  %v1408_v58 = vsel %vm321_vm3, -inf, %v1811_v46 }
 0x1fb   :  { %v1411_v60 = vsel %vm322_vm4, -inf, %v1130_v29  ;;  %v1414_v61 = vsel %vm323_vm5, -inf, %v1134_v37  ;;  %v1417_v62 = vsel %vm324_vm6, -inf, %v1140_v43  ;;  %v1420_v26 = vsel %vm325_vm7, -inf, %v1812_v49 }
 0x1fc   :  { %vm326_vm8 = vcmp.eq.s32.totalorder %v1269_v20, %v317_v48  ;;  %vm327_vm9 = vcmp.eq.s32.totalorder %v1272_v21, %v317_v48  ;;  %vm328_vm10 = vcmp.eq.s32.totalorder %v1275_v22, %v317_v48  ;;  %vm329_vm11 = vcmp.eq.s32.totalorder %v1278_v23, %v317_v48 }
 0x1fd   :  { %vm330_vm12 = vcmp.eq.s32.totalorder %v1283_v25, %v317_v48  ;;  %vm331_vm13 = vcmp.eq.s32.totalorder %v1286_v27, %v317_v48  ;;  %vm332_vm14 = vcmp.eq.s32.totalorder %v1289_v28, %v317_v48  ;;  %vm333_vm15 = vcmp.eq.s32.totalorder %v1292_v30, %v317_v48 }
 0x1fe   :  { %v350_v29 = vmax.f32 %v1399_v51, %v1411_v60  ;;  %v351_v33 = vmax.f32 %v1402_v53, %v1414_v61  ;;  %v352_v37 = vmax.f32 %v1405_v55, %v1417_v62  ;;  %v353_v39 = vmax.f32 %v1408_v58, %v1420_v26 }
 0x1ff   :  { %v1439_v43 = vsel %vm326_vm8, -inf, %v1138_v41  ;;  %v1442_v46 = vsel %vm327_vm9, -inf, %v1145_v47  ;;  %v1445_v49 = vsel %vm328_vm10, -inf, %v1155_v52  ;;  %v1448_v63 = vsel %vm329_vm11, -inf, %v1813_v56 }
 0x200   :  { %v354_v15 = vmax.f32 %v350_v29, %v1439_v43  ;;  %v355_v16 = vmax.f32 %v351_v33, %v1442_v46  ;;  %v356_v17 = vmax.f32 %v352_v37, %v1445_v49  ;;  %v357_v18 = vmax.f32 %v353_v39, %v1448_v63 }
 0x201   :  { %v1457_v41 = vsel %vm330_vm12, -inf, %v1151_v50  ;;  %v1462_v47 = vsel %vm331_vm13, -inf, %v1159_v54  ;;  %v1467_v52 = vsel %vm332_vm14, -inf, %v1166_v57  ;;  %v1472_v56 = vsel %vm333_vm15, -inf, %v1814_v59 }
 0x202   :  { %v358_v0 = vmax.f32 %v354_v15, %v1457_v41  ;;  %v359_v50 = vmax.f32 %v355_v16, %v1462_v47  ;;  %v360_v1 = vmax.f32 %v356_v17, %v1467_v52  ;;  %v361_v2 = vmax.f32 %v357_v18, %v1472_v56 }
 0x204   :  { %v362_v54 = vmax.f32 %v358_v0, %v359_v50  ;;  %v363_v3 = vmax.f32 %v360_v1, %v361_v2 }
 0x206   :  { %v364_v4 = vmax.f32 %v362_v54, %v363_v3 }
 0x208   :  { %365 = vmax.xlane.f32.xlu1 %v364_v4 }
 0x291   :  { %v1478_v5 = vpop.xlane.xlu1 %365 }
 0x292   :  { %vm368_vm0 = vcmp.eq.f32.partialorder %v1399_v51, %v1478_v5  ;;  %vm369_vm1 = vcmp.eq.f32.partialorder %v1402_v53, %v1478_v5  ;;  %vm370_vm2 = vcmp.eq.f32.partialorder %v1405_v55, %v1478_v5  ;;  %vm371_vm3 = vcmp.eq.f32.partialorder %v1408_v58, %v1478_v5 }
 0x293   :  { %vm372_vm4 = vcmp.eq.f32.partialorder %v1411_v60, %v1478_v5  ;;  %vm373_vm5 = vcmp.eq.f32.partialorder %v1414_v61, %v1478_v5  ;;  %vm374_vm6 = vcmp.eq.f32.partialorder %v1417_v62, %v1478_v5  ;;  %vm375_vm7 = vcmp.eq.f32.partialorder %v1420_v26, %v1478_v5 }
 0x294   :  { %vm376_vm8 = vcmp.eq.f32.partialorder %v1439_v43, %v1478_v5  ;;  %vm377_vm9 = vcmp.eq.f32.partialorder %v1442_v46, %v1478_v5  ;;  %vm378_vm10 = vcmp.eq.f32.partialorder %v1445_v49, %v1478_v5  ;;  %vm379_vm11 = vcmp.eq.f32.partialorder %v1448_v63, %v1478_v5 }
 0x295   :  { %vm380_vm12 = vcmp.eq.f32.partialorder %v1457_v41, %v1478_v5  ;;  %vm381_vm13 = vcmp.eq.f32.partialorder %v1462_v47, %v1478_v5  ;;  %vm382_vm14 = vcmp.eq.f32.partialorder %v1467_v52, %v1478_v5  ;;  %vm383_vm15 = vcmp.eq.f32.partialorder %v1472_v56, %v1478_v5 }
 0x296   :  { %v384_v57 = vsel %vm368_vm0, %v1245_v8, 2048  ;;  %v385_v59 = vsel %vm369_vm1, %v1248_v9, 2048  ;;  %v386_v6 = vsel %vm370_vm2, %v1251_v10, 2048  ;;  %v387_v7 = vsel %vm371_vm3, %v1254_v11, 2048 }
 0x297   :  { %v388_v31 = vsel %vm372_vm4, %v1257_v12, 2048  ;;  %v389_v32 = vsel %vm373_vm5, %v1260_v13, 2048  ;;  %v390_v34 = vsel %vm374_vm6, %v1263_v14, 2048  ;;  %v391_v35 = vsel %vm375_vm7, %v1266_v19, 2048 }
 0x298   :  { %v392_v36 = vsel %vm376_vm8, %v1269_v20, 2048  ;;  %v393_v38 = vsel %vm377_vm9, %v1272_v21, 2048  ;;  %v394_v40 = vsel %vm378_vm10, %v1275_v22, 2048  ;;  %v395_v42 = vsel %vm379_vm11, %v1278_v23, 2048 }
 0x299   :  { %v396_v44 = vsel %vm380_vm12, %v1283_v25, 2048  ;;  %v397_v45 = vsel %vm381_vm13, %v1286_v27, 2048  ;;  %v398_v48 = vsel %vm382_vm14, %v1289_v28, 2048  ;;  %v399_v29 = vsel %vm383_vm15, %v1292_v30, 2048 }
 0x29a   :  { %vm400_vm0 = vcmp.lt.s32.totalorder %v384_v57, %v388_v31  ;;  %vm402_vm1 = vcmp.lt.s32.totalorder %v385_v59, %v389_v32  ;;  %vm404_vm2 = vcmp.lt.s32.totalorder %v386_v6, %v390_v34  ;;  %vm406_vm3 = vcmp.lt.s32.totalorder %v387_v7, %v391_v35 }
 0x29b   :  { %v401_v33 = vsel %vm400_vm0, %v384_v57, %v388_v31  ;;  %v403_v37 = vsel %vm402_vm1, %v385_v59, %v389_v32  ;;  %v405_v39 = vsel %vm404_vm2, %v386_v6, %v390_v34  ;;  %v407_v15 = vsel %vm406_vm3, %v387_v7, %v391_v35 }
 0x29c   :  { %vm408_vm4 = vcmp.lt.s32.totalorder %v401_v33, %v392_v36  ;;  %vm410_vm5 = vcmp.lt.s32.totalorder %v403_v37, %v393_v38  ;;  %vm412_vm6 = vcmp.lt.s32.totalorder %v405_v39, %v394_v40  ;;  %vm414_vm7 = vcmp.lt.s32.totalorder %v407_v15, %v395_v42 }
 0x29d   :  { %v409_v16 = vsel %vm408_vm4, %v401_v33, %v392_v36  ;;  %v411_v17 = vsel %vm410_vm5, %v403_v37, %v393_v38  ;;  %v413_v18 = vsel %vm412_vm6, %v405_v39, %v394_v40  ;;  %v415_v0 = vsel %vm414_vm7, %v407_v15, %v395_v42 }
 0x29e   :  { %vm416_vm8 = vcmp.lt.s32.totalorder %v409_v16, %v396_v44  ;;  %vm418_vm9 = vcmp.lt.s32.totalorder %v411_v17, %v397_v45  ;;  %vm420_vm10 = vcmp.lt.s32.totalorder %v413_v18, %v398_v48  ;;  %vm422_vm11 = vcmp.lt.s32.totalorder %v415_v0, %v399_v29 }
 0x29f   :  { %v417_v50 = vsel %vm416_vm8, %v409_v16, %v396_v44  ;;  %v419_v1 = vsel %vm418_vm9, %v411_v17, %v397_v45  ;;  %v421_v2 = vsel %vm420_vm10, %v413_v18, %v398_v48  ;;  %v423_v54 = vsel %vm422_vm11, %v415_v0, %v399_v29 }
 0x2a0   :  { %vm424_vm12 = vcmp.lt.s32.totalorder %v417_v50, %v419_v1  ;;  %vm426_vm13 = vcmp.lt.s32.totalorder %v421_v2, %v423_v54 }
 0x2a1   :  { %v425_v3 = vsel %vm424_vm12, %v417_v50, %v419_v1  ;;  %v427_v4 = vsel %vm426_vm13, %v421_v2, %v423_v54 }
 0x2a2   :  { %vm428_vm14 = vcmp.lt.s32.totalorder %v425_v3, %v427_v4 }
 0x2a3   :  { %v429_v57 = vsel %vm428_vm14, %v425_v3, %v427_v4 }
 0x2a4   :  { %v431_v59 = vshra.s32 %v429_v57, 16  ;;  %v430_v7 = vand.u32 65535, %v429_v57 }
 0x2a6   :  { %v433_v6 = vcvt.s32.f32 %v431_v59  ;;  %v432_v32 = vcvt.s32.f32 %v430_v7 }
 0x2a8   :  { %434 = vmin.xlane.f32.xlu0 %v433_v6 }
 0x331   :  { %v435_v31 = vpop.xlane.xlu0 %434 }
 0x332   :  { %vm436_vm15 = vcmp.eq.f32.partialorder %v433_v6, %v435_v31  ;;  %v441_v35 = vcvt.f32.s32 %v435_v31 }
 0x333   :  { %v437_v34 = vsel %vm436_vm15, %v432_v32, inf }
 0x334   :  { %438 = vmin.xlane.f32.xlu1 %v437_v34  ;;  %v442_v38 = vshll.u32 %v441_v35, 16 }
 0x3bd   :  { %v439_v36 = vpop.xlane.xlu1 %438 }
 0x3be   :  { %v440_v40 = vcvt.f32.s32 %v439_v36 }
 0x3c0   :  { %v443_v42 = vadd.s32 %v442_v38, %v440_v40 }
 0x3c2   :  { %vm444_vm0 = vcmp.eq.s32.totalorder %v1245_v8, %v443_v42  ;;  %vm445_vm1 = vcmp.eq.s32.totalorder %v1248_v9, %v443_v42  ;;  %vm446_vm2 = vcmp.eq.s32.totalorder %v1251_v10, %v443_v42  ;;  %vm447_vm3 = vcmp.eq.s32.totalorder %v1254_v11, %v443_v42 }
 0x3c3   :  { %vm448_vm4 = vcmp.eq.s32.totalorder %v1257_v12, %v443_v42  ;;  %vm449_vm5 = vcmp.eq.s32.totalorder %v1260_v13, %v443_v42  ;;  %vm450_vm6 = vcmp.eq.s32.totalorder %v1263_v14, %v443_v42  ;;  %vm451_vm7 = vcmp.eq.s32.totalorder %v1266_v19, %v443_v42 }
 0x3c4   :  { %v1585_v44 = vsel %vm444_vm0, -inf, %v1399_v51  ;;  %v1588_v45 = vsel %vm445_vm1, -inf, %v1402_v53  ;;  %v1591_v48 = vsel %vm446_vm2, -inf, %v1405_v55  ;;  %v1594_v29 = vsel %vm447_vm3, -inf, %v1408_v58 }
 0x3c5   :  { %v1597_v33 = vsel %vm448_vm4, -inf, %v1411_v60  ;;  %v1600_v37 = vsel %vm449_vm5, -inf, %v1414_v61  ;;  %v1603_v39 = vsel %vm450_vm6, -inf, %v1417_v62  ;;  %v1606_v51 = vsel %vm451_vm7, -inf, %v1420_v26 }
 0x3c6   :  { %vm452_vm8 = vcmp.eq.s32.totalorder %v1269_v20, %v443_v42  ;;  %vm453_vm9 = vcmp.eq.s32.totalorder %v1272_v21, %v443_v42  ;;  %vm454_vm10 = vcmp.eq.s32.totalorder %v1275_v22, %v443_v42  ;;  %vm455_vm11 = vcmp.eq.s32.totalorder %v1278_v23, %v443_v42 }
 0x3c7   :  { %vm456_vm12 = vcmp.eq.s32.totalorder %v1283_v25, %v443_v42  ;;  %vm457_vm13 = vcmp.eq.s32.totalorder %v1286_v27, %v443_v42  ;;  %vm458_vm14 = vcmp.eq.s32.totalorder %v1289_v28, %v443_v42  ;;  %vm459_vm15 = vcmp.eq.s32.totalorder %v1292_v30, %v443_v42 }
 0x3c8   :  { %v476_v53 = vmax.f32 %v1585_v44, %v1597_v33  ;;  %v477_v55 = vmax.f32 %v1588_v45, %v1600_v37  ;;  %v478_v58 = vmax.f32 %v1591_v48, %v1603_v39  ;;  %v479_v60 = vmax.f32 %v1594_v29, %v1606_v51 }
 0x3c9   :  { %v1625_v61 = vsel %vm452_vm8, -inf, %v1439_v43  ;;  %v1628_v62 = vsel %vm453_vm9, -inf, %v1442_v46  ;;  %v1631_v26 = vsel %vm454_vm10, -inf, %v1445_v49  ;;  %v1634_v15 = vsel %vm455_vm11, -inf, %v1448_v63 }
 0x3ca   :  { %v480_v16 = vmax.f32 %v476_v53, %v1625_v61  ;;  %v481_v17 = vmax.f32 %v477_v55, %v1628_v62  ;;  %v482_v18 = vmax.f32 %v478_v58, %v1631_v26  ;;  %v483_v0 = vmax.f32 %v479_v60, %v1634_v15 }
 0x3cb   :  { %v1643_v43 = vsel %vm456_vm12, -inf, %v1457_v41  ;;  %v1648_v46 = vsel %vm457_vm13, -inf, %v1462_v47  ;;  %v1653_v49 = vsel %vm458_vm14, -inf, %v1467_v52  ;;  %v1658_v63 = vsel %vm459_vm15, -inf, %v1472_v56 }
 0x3cc   :  { %v484_v50 = vmax.f32 %v480_v16, %v1643_v43  ;;  %v485_v41 = vmax.f32 %v481_v17, %v1648_v46  ;;  %v486_v1 = vmax.f32 %v482_v18, %v1653_v49  ;;  %v487_v2 = vmax.f32 %v483_v0, %v1658_v63 }
 0x3ce   :  { %v488_v47 = vmax.f32 %v484_v50, %v485_v41  ;;  %v489_v54 = vmax.f32 %v486_v1, %v487_v2 }
 0x3d0   :  { %v490_v3 = vmax.f32 %v488_v47, %v489_v54 }
 0x3d2   :  { %491 = vmax.xlane.f32.xlu0 %v490_v3 }
 0x45b   :  { %v1664_v4 = vpop.xlane.xlu0 %491 }
 0x45c   :  { %vm494_vm0 = vcmp.eq.f32.partialorder %v1585_v44, %v1664_v4  ;;  %vm495_vm1 = vcmp.eq.f32.partialorder %v1588_v45, %v1664_v4  ;;  %vm496_vm2 = vcmp.eq.f32.partialorder %v1591_v48, %v1664_v4  ;;  %vm497_vm3 = vcmp.eq.f32.partialorder %v1594_v29, %v1664_v4 }
 0x45d   :  { %vm498_vm4 = vcmp.eq.f32.partialorder %v1597_v33, %v1664_v4  ;;  %vm499_vm5 = vcmp.eq.f32.partialorder %v1600_v37, %v1664_v4  ;;  %vm500_vm6 = vcmp.eq.f32.partialorder %v1603_v39, %v1664_v4  ;;  %vm501_vm7 = vcmp.eq.f32.partialorder %v1606_v51, %v1664_v4 }
 0x45e   :  { %vm502_vm8 = vcmp.eq.f32.partialorder %v1625_v61, %v1664_v4  ;;  %vm503_vm9 = vcmp.eq.f32.partialorder %v1628_v62, %v1664_v4  ;;  %vm504_vm10 = vcmp.eq.f32.partialorder %v1631_v26, %v1664_v4  ;;  %vm505_vm11 = vcmp.eq.f32.partialorder %v1634_v15, %v1664_v4 }
 0x45f   :  { %vm506_vm12 = vcmp.eq.f32.partialorder %v1643_v43, %v1664_v4  ;;  %vm507_vm13 = vcmp.eq.f32.partialorder %v1648_v46, %v1664_v4  ;;  %vm508_vm14 = vcmp.eq.f32.partialorder %v1653_v49, %v1664_v4  ;;  %vm509_vm15 = vcmp.eq.f32.partialorder %v1658_v63, %v1664_v4 }
 0x460   :  { %v510_v52 = vsel %vm494_vm0, %v1245_v8, 2048  ;;  %v511_v56 = vsel %vm495_vm1, %v1248_v9, 2048  ;;  %v512_v57 = vsel %vm496_vm2, %v1251_v10, 2048  ;;  %v513_v59 = vsel %vm497_vm3, %v1254_v11, 2048 }
 0x461   :  { %v514_v6 = vsel %vm498_vm4, %v1257_v12, 2048  ;;  %v515_v7 = vsel %vm499_vm5, %v1260_v13, 2048  ;;  %v516_v31 = vsel %vm500_vm6, %v1263_v14, 2048  ;;  %v517_v32 = vsel %vm501_vm7, %v1266_v19, 2048 }
 0x462   :  { %v518_v34 = vsel %vm502_vm8, %v1269_v20, 2048  ;;  %v519_v35 = vsel %vm503_vm9, %v1272_v21, 2048  ;;  %v520_v36 = vsel %vm504_vm10, %v1275_v22, 2048  ;;  %v521_v38 = vsel %vm505_vm11, %v1278_v23, 2048 }
 0x463   :  { %v522_v40 = vsel %vm506_vm12, %v1283_v25, 2048  ;;  %v523_v42 = vsel %vm507_vm13, %v1286_v27, 2048  ;;  %v524_v53 = vsel %vm508_vm14, %v1289_v28, 2048  ;;  %v525_v55 = vsel %vm509_vm15, %v1292_v30, 2048 }
 0x464   :  { %vm526_vm0 = vcmp.lt.s32.totalorder %v510_v52, %v514_v6  ;;  %vm528_vm1 = vcmp.lt.s32.totalorder %v511_v56, %v515_v7  ;;  %vm530_vm2 = vcmp.lt.s32.totalorder %v512_v57, %v516_v31  ;;  %vm532_vm3 = vcmp.lt.s32.totalorder %v513_v59, %v517_v32 }
 0x465   :  { %v527_v58 = vsel %vm526_vm0, %v510_v52, %v514_v6  ;;  %v529_v60 = vsel %vm528_vm1, %v511_v56, %v515_v7  ;;  %v531_v16 = vsel %vm530_vm2, %v512_v57, %v516_v31  ;;  %v533_v17 = vsel %vm532_vm3, %v513_v59, %v517_v32 }
 0x466   :  { %vm534_vm4 = vcmp.lt.s32.totalorder %v527_v58, %v518_v34  ;;  %vm536_vm5 = vcmp.lt.s32.totalorder %v529_v60, %v519_v35  ;;  %vm538_vm6 = vcmp.lt.s32.totalorder %v531_v16, %v520_v36  ;;  %vm540_vm7 = vcmp.lt.s32.totalorder %v533_v17, %v521_v38 }
 0x467   :  { %v535_v18 = vsel %vm534_vm4, %v527_v58, %v518_v34  ;;  %v537_v0 = vsel %vm536_vm5, %v529_v60, %v519_v35  ;;  %v539_v50 = vsel %vm538_vm6, %v531_v16, %v520_v36  ;;  %v541_v41 = vsel %vm540_vm7, %v533_v17, %v521_v38 }
 0x468   :  { %vm542_vm8 = vcmp.lt.s32.totalorder %v535_v18, %v522_v40  ;;  %vm544_vm9 = vcmp.lt.s32.totalorder %v537_v0, %v523_v42  ;;  %vm546_vm10 = vcmp.lt.s32.totalorder %v539_v50, %v524_v53  ;;  %vm548_vm11 = vcmp.lt.s32.totalorder %v541_v41, %v525_v55 }
 0x469   :  { %v543_v1 = vsel %vm542_vm8, %v535_v18, %v522_v40  ;;  %v545_v2 = vsel %vm544_vm9, %v537_v0, %v523_v42  ;;  %v547_v47 = vsel %vm546_vm10, %v539_v50, %v524_v53  ;;  %v549_v54 = vsel %vm548_vm11, %v541_v41, %v525_v55 }
 0x46a   :  { %vm550_vm12 = vcmp.lt.s32.totalorder %v543_v1, %v545_v2  ;;  %vm552_vm13 = vcmp.lt.s32.totalorder %v547_v47, %v549_v54 }
 0x46b   :  { %v551_v3 = vsel %vm550_vm12, %v543_v1, %v545_v2  ;;  %v553_v52 = vsel %vm552_vm13, %v547_v47, %v549_v54 }
 0x46c   :  { %vm554_vm14 = vcmp.lt.s32.totalorder %v551_v3, %v553_v52 }
 0x46d   :  { %v555_v56 = vsel %vm554_vm14, %v551_v3, %v553_v52 }
 0x46e   :  { %v557_v57 = vshra.s32 %v555_v56, 16  ;;  %v556_v6 = vand.u32 65535, %v555_v56 }
 0x470   :  { %v559_v59 = vcvt.s32.f32 %v557_v57  ;;  %v558_v31 = vcvt.s32.f32 %v556_v6 }
 0x472   :  { %560 = vmin.xlane.f32.xlu1 %v559_v59 }
 0x4fb   :  { %v561_v7 = vpop.xlane.xlu1 %560 }
 0x4fc   :  { %vm562_vm15 = vcmp.eq.f32.partialorder %v559_v59, %v561_v7  ;;  %v567_v34 = vcvt.f32.s32 %v561_v7 }
 0x4fd   :  { %v563_v32 = vsel %vm562_vm15, %v558_v31, inf }
 0x4fe   :  { %564 = vmin.xlane.f32.xlu0 %v563_v32  ;;  %v568_v36 = vshll.u32 %v567_v34, 16 }
 0x587   :  { %v565_v35 = vpop.xlane.xlu0 %564 }
 0x588   :  { %v566_v38 = vcvt.f32.s32 %v565_v35 }
 0x58a   :  { %v569_v40 = vadd.s32 %v568_v36, %v566_v38 }
 0x58c   :  { %vm570_vm0 = vcmp.eq.s32.totalorder %v1245_v8, %v569_v40  ;;  %vm571_vm1 = vcmp.eq.s32.totalorder %v1248_v9, %v569_v40  ;;  %vm572_vm2 = vcmp.eq.s32.totalorder %v1251_v10, %v569_v40  ;;  %vm573_vm3 = vcmp.eq.s32.totalorder %v1254_v11, %v569_v40 }
 0x58d   :  { %vm574_vm4 = vcmp.eq.s32.totalorder %v1257_v12, %v569_v40  ;;  %vm575_vm5 = vcmp.eq.s32.totalorder %v1260_v13, %v569_v40  ;;  %vm576_vm6 = vcmp.eq.s32.totalorder %v1263_v14, %v569_v40  ;;  %vm577_vm7 = vcmp.eq.s32.totalorder %v1266_v19, %v569_v40 }
 0x58e   :  { %v586_v42 = vsel %vm570_vm0, -inf, %v1585_v44  ;;  %v587_v53 = vsel %vm571_vm1, -inf, %v1588_v45  ;;  %v588_v8 = vsel %vm572_vm2, -inf, %v1591_v48  ;;  %v589_v9 = vsel %vm573_vm3, -inf, %v1594_v29 }
 0x58f   :  { %v590_v10 = vsel %vm574_vm4, -inf, %v1597_v33  ;;  %v591_v11 = vsel %vm575_vm5, -inf, %v1600_v37  ;;  %v592_v12 = vsel %vm576_vm6, -inf, %v1603_v39  ;;  %v593_v13 = vsel %vm577_vm7, -inf, %v1606_v51 }
 0x590   :  { %vm578_vm8 = vcmp.eq.s32.totalorder %v1269_v20, %v569_v40  ;;  %vm579_vm9 = vcmp.eq.s32.totalorder %v1272_v21, %v569_v40  ;;  %vm580_vm10 = vcmp.eq.s32.totalorder %v1275_v22, %v569_v40  ;;  %vm581_vm11 = vcmp.eq.s32.totalorder %v1278_v23, %v569_v40 }
 0x591   :  { %vm582_vm12 = vcmp.eq.s32.totalorder %v1283_v25, %v569_v40  ;;  %vm583_vm13 = vcmp.eq.s32.totalorder %v1286_v27, %v569_v40  ;;  %vm584_vm14 = vcmp.eq.s32.totalorder %v1289_v28, %v569_v40  ;;  %vm585_vm15 = vcmp.eq.s32.totalorder %v1292_v30, %v569_v40 }
 0x592   :  { %v602_v14 = vmax.f32 %v586_v42, %v590_v10  ;;  %v603_v19 = vmax.f32 %v587_v53, %v591_v11  ;;  %v604_v44 = vmax.f32 %v588_v8, %v592_v12  ;;  %v605_v45 = vmax.f32 %v589_v9, %v593_v13 }
 0x593   :  { %v594_v20 = vsel %vm578_vm8, -inf, %v1625_v61  ;;  %v595_v21 = vsel %vm579_vm9, -inf, %v1628_v62  ;;  %v596_v22 = vsel %vm580_vm10, -inf, %v1631_v26  ;;  %v597_v23 = vsel %vm581_vm11, -inf, %v1634_v15 }
 0x594   :  { %v606_v48 = vmax.f32 %v602_v14, %v594_v20  ;;  %v607_v29 = vmax.f32 %v603_v19, %v595_v21  ;;  %v608_v33 = vmax.f32 %v604_v44, %v596_v22  ;;  %v609_v37 = vmax.f32 %v605_v45, %v597_v23 }
 0x595   :  { %v598_v39 = vsel %vm582_vm12, -inf, %v1643_v43  ;;  %v599_v51 = vsel %vm583_vm13, -inf, %v1648_v46  ;;  %v600_v61 = vsel %vm584_vm14, -inf, %v1653_v49  ;;  %v601_v62 = vsel %vm585_vm15, -inf, %v1658_v63 }
 0x596   :  { %v610_v26 = vmax.f32 %v606_v48, %v598_v39  ;;  %v611_v15 = vmax.f32 %v607_v29, %v599_v51  ;;  %v612_v55 = vmax.f32 %v608_v33, %v600_v61  ;;  %v613_v58 = vmax.f32 %v609_v37, %v601_v62 }
 0x597   :  { %v367_v27 = vadd.f32 %v1478_v5, %v1280_v24  ;;  %vm620_vm0 = vcmask 7168  }
 0x598   :  { %v614_v60 = vmax.f32 %v610_v26, %v611_v15  ;;  %v615_v16 = vmax.f32 %v612_v55, %v613_v58 }
 0x599   :  { %v493_v43 = vadd.f32 %v1664_v4, %v367_v27 }
 0x59a   :  { %v616_v25 = vmax.f32 %v614_v60, %v615_v16 }
 0x59c   :  { %617 = vmax.xlane.f32.xlu1 %v616_v25 }
 0x625   :  { %v618_v28 = vpop.xlane.xlu1 %617 }
 0x626   :  { %v619_v46 = vadd.f32 %v618_v28, %v493_v43 }
 0x628   :  { %621 = vst.msk [vmem:[%s1810_s2] sm:$0xff] %vm620_vm0, %v619_v46 }
 0x629   :  { %626 = vsyncpa [#allocation4], 1 }
 0x62a   :  { %627 = vsyncpa [#allocation6], 1 }

</bundles_post_ra>
